<compile_context>
chip_gen: v7x
topology: tpu7x:2x2x1
jax: 0.10.0
libtpu: 0.0.40
codegen_flags: <defaults>
</compile_context>

<pallas_src>
import functools
import math

import jax
import jax.numpy as jnp
from jax import lax
from jax.experimental import pallas as pl
from jax.experimental.pallas import tpu as pltpu

GP_EPS = 1e-5  # GroupScaling1D eps (hard-coded default in the PyTorch module)


def _round_up(x, m):
    return (x + m - 1) // m * m


def _group_scale(x_f32, seg, segt, inv_cg):
    """xg = x / sqrt(mean(x^2 over its group) + GP_EPS) for a (tm, C_pack) tile."""
    xsq = x_f32 * x_f32
    if seg is None:
        # Single group spanning all lanes: XLU lane reduce, rsqrt (EUP) on (tm, 1) only.
        m2 = jnp.sum(xsq, axis=-1, keepdims=True) * inv_cg
        return x_f32 * lax.rsqrt(m2 + GP_EPS)
    # Segmented (lane-packed rows and/or group_num > 1): per-segment sums via a skinny MXU
    # matmul, rsqrt on the reduced (tm, n_seg) moments, broadcast back with a 0/1 matrix
    # (exact: each output lane receives exactly one term multiplied by 1.0).
    ssum = jnp.dot(xsq, seg, preferred_element_type=jnp.float32)        # (tm, n_seg)
    inv = lax.rsqrt(ssum * inv_cg + GP_EPS)                             # (tm, n_seg)
    return x_f32 * jnp.dot(inv, segt, preferred_element_type=jnp.float32)


def _row_mask(tm, valid_rows):
    """Mask for rows of the (padded) last block that fall outside the real array."""
    row = lax.broadcasted_iota(jnp.int32, (tm, 1), 0) + pl.program_id(0) * tm
    return row < valid_rows


# ---------------- stage 1: per-block partial per-channel sum of xg^2 ----------------

def _stage1_reduce_kernel(x_ref, ssq_ref, *, inv_cg, tm, valid_rows):
    xg = _group_scale(x_ref[...].astype(jnp.float32), None, None, inv_cg)
    if valid_rows is not None:
        xg = jnp.where(_row_mask(tm, valid_rows), xg, 0.0)
    ssq_ref[...] = jnp.sum(xg * xg, axis=0, keepdims=True)[None]        # (1, 1, C_pack)


def _stage1_seg_kernel(x_ref, seg_ref, segt_ref, ssq_ref, *, inv_cg, tm, valid_rows):
    xg = _group_scale(x_ref[...].astype(jnp.float32), seg_ref[...], segt_ref[...], inv_cg)
    if valid_rows is not None:
        xg = jnp.where(_row_mask(tm, valid_rows), xg, 0.0)
    ssq_ref[...] = jnp.sum(xg * xg, axis=0, keepdims=True)[None]


# ---------------- stage 2: recompute xg, apply precomputed scale/bias (FMA) ----------

def _stage2_reduce_kernel(x_ref, scale_ref, bias_ref, o_ref, *, inv_cg):
    xg = _group_scale(x_ref[...].astype(jnp.float32), None, None, inv_cg)
    o_ref[...] = (xg * scale_ref[...] + bias_ref[...]).astype(o_ref.dtype)


def _stage2_seg_kernel(x_ref, seg_ref, segt_ref, scale_ref, bias_ref, o_ref, *, inv_cg):
    xg = _group_scale(x_ref[...].astype(jnp.float32), seg_ref[...], segt_ref[...], inv_cg)
    o_ref[...] = (xg * scale_ref[...] + bias_ref[...]).astype(o_ref.dtype)


# ---------------------------------- wrappers ----------------------------------------

def mask_power_norm_fwd_tbc(x_tbc, weight, bias, *, eps=1e-5, group_num=1,
                            target_tile_bytes=4 * 1024 * 1024, max_tm=8192,
                            max_c_pack=1024):
    """Forward on (T, B, C)-layout input. Output (T, B, C) in the input dtype."""
    T, B, C = x_tbc.shape
    M = T * B
    assert C % group_num == 0
    Cg = C // group_num
    inv_cg = 1.0 / float(Cg)
    dtype = x_tbc.dtype
    itemsize = jnp.dtype(dtype).itemsize

    # --- lane packing: p logical C-channel rows per (p*C)-lane physical row, p*C % 128 == 0 ---
    p = 1
    if C < 128:
        p = 128 // math.gcd(C, 128)            # p*C = lcm(C, 128)
        if p * C > max_c_pack:
            p = 1                               # pathological C: fall back (masked tail stores)
    C_pack = p * C

    x_flat = x_tbc.reshape(M, C)                # contiguous reshape: free
    Mp = _round_up(M, p)
    if Mp != M:
        # a few zero rows so the packing reshape is dense; zero rows give xg = 0 (inert in
        # var since we divide by the true M) and are sliced off at the end.
        x_flat = jnp.pad(x_flat, ((0, Mp - M), (0, 0)))
    M_rows = Mp // p
    x_packed = x_flat.reshape(M_rows, C_pack)   # contiguous reshape: free

    # segments per packed row (each segment is one scaling group of Cg channels)
    n_seg = p * group_num
    seg = segt = None
    n_seg_pad = 0
    if n_seg > 1:
        n_seg_pad = _round_up(max(n_seg, 8), 8)  # pad to sublane multiple; zero cols are inert
        lane = jnp.arange(C_pack)
        seg_id = (lane // C) * group_num + (lane % C) // Cg
        seg = (seg_id[:, None] == jnp.arange(n_seg_pad)[None, :]).astype(jnp.float32)
        segt = jnp.transpose(seg)                                       # (n_seg_pad, C_pack)

    # --- row tile: ~4 MiB so per-grid-step overhead is amortized; keep an even (>=2) block
    #     count so both v7x TensorCores get balanced halves of the "parallel" axis ---
    if M_rows <= 8:
        tm = max(M_rows, 1)
    else:
        tm = max(8, min(max_tm, target_tile_bytes // (C_pack * itemsize)))
        tm = (tm // 8) * 8
        tm = min(tm, _round_up(M_rows, 8))
        nblk = pl.cdiv(M_rows, tm)
        if nblk % 2 == 1:
            tm_alt = max(8, _round_up(pl.cdiv(M_rows, nblk + 1), 8))
            if pl.cdiv(M_rows, tm_alt) % 2 == 0:
                tm = tm_alt
    nblk = pl.cdiv(M_rows, tm)
    grid = (nblk,)
    # Ragged last block: Pallas pads the block; garbage rows are masked out of the stage-1
    # reduction, and stage-2 writes to the padded region are dropped automatically.
    valid_rows = M_rows if (M_rows % tm) != 0 else None

    cparams = pltpu.CompilerParams(
        dimension_semantics=("parallel",),        # per-block partials -> no accumulator race
        vmem_limit_bytes=32 * 1024 * 1024,        # 2x(in+out) 4 MiB tiles + consts fit easily
    )

    x_spec = pl.BlockSpec((tm, C_pack), lambda i: (i, 0))
    row_spec = pl.BlockSpec((1, C_pack), lambda i: (0, 0))

    # ---- stage 1 ----
    if n_seg > 1:
        seg_spec = pl.BlockSpec((C_pack, n_seg_pad), lambda i: (0, 0))
        segt_spec = pl.BlockSpec((n_seg_pad, C_pack), lambda i: (0, 0))
        s1_kernel = functools.partial(_stage1_seg_kernel, inv_cg=inv_cg, tm=tm,
                                      valid_rows=valid_rows)
        s1_in = [x_spec, seg_spec, segt_spec]
        s1_args = (x_packed, seg, segt)
    else:
        s1_kernel = functools.partial(_stage1_reduce_kernel, inv_cg=inv_cg, tm=tm,
                                      valid_rows=valid_rows)
        s1_in = [x_spec]
        s1_args = (x_packed,)

    partials = pl.pallas_call(
        s1_kernel,
        out_shape=jax.ShapeDtypeStruct((nblk, 1, C_pack), jnp.float32),
        grid=grid,
        in_specs=s1_in,
        out_specs=pl.BlockSpec((1, 1, C_pack), lambda i: (i, 0, 0)),
        compiler_params=cparams,
    )(*s1_args)

    # tiny JAX reduction over block partials -> per-channel var -> fused scale
    ssq = partials.sum(axis=(0, 1)).reshape(p, C).sum(axis=0)           # (C,)
    var = ssq / float(M)                                                # true M, pad rows inert
    scale = weight.astype(jnp.float32) / jnp.sqrt(var + eps)            # (C,)
    scale_p = jnp.tile(scale, p).reshape(1, C_pack)
    bias_p = jnp.tile(bias.astype(jnp.float32), p).reshape(1, C_pack)

    # ---- stage 2 ----
    if n_seg > 1:
        s2_kernel = functools.partial(_stage2_seg_kernel, inv_cg=inv_cg)
        s2_in = [x_spec, seg_spec, segt_spec, row_spec, row_spec]
        s2_args = (x_packed, seg, segt, scale_p, bias_p)
    else:
        s2_kernel = functools.partial(_stage2_reduce_kernel, inv_cg=inv_cg)
        s2_in = [x_spec, row_spec, row_spec]
        s2_args = (x_packed, scale_p, bias_p)

    out_packed = pl.pallas_call(
        s2_kernel,
        out_shape=jax.ShapeDtypeStruct((M_rows, C_pack), dtype),
        grid=grid,
        in_specs=s2_in,
        out_specs=x_spec,
        compiler_params=cparams,
    )(*s2_args)

    out_flat = out_packed.reshape(Mp, C)
    if Mp != M:
        out_flat = out_flat[:M]
    return out_flat.reshape(T, B, C)


def mask_power_norm_fwd(x_nchw, weight, bias, *, eps=1e-5, group_num=1):
    """NCHW entry point matching the PyTorch module (returns (H*W, N, C))."""
    N, C, H, W = x_nchw.shape
    # NCHW -> (T=H*W, B=N, C), matching input.permute(2, 3, 0, 1).view(H*W, N, C).
    # TODO(synk): standalone XLA transpose = one extra HBM read+write; see header TODO.
    x_tbc = jnp.transpose(x_nchw, (2, 3, 0, 1)).reshape(H * W, N, C)
    return mask_power_norm_fwd_tbc(x_tbc, weight, bias, eps=eps, group_num=group_num)


def mask_power_norm_reference(x_nchw, weight, bias, *, eps=1e-5, group_num=1):
    """Pure-JAX reference mirroring the PyTorch forward (training, warm-up, no pad_mask)."""
    N, C, H, W = x_nchw.shape
    T = H * W
    x = jnp.transpose(x_nchw, (2, 3, 0, 1)).reshape(T, N, C).astype(jnp.float32)
    Cg = C // group_num
    gn = x.reshape(T, N, group_num, Cg)
    m2 = jnp.mean(gn * gn, axis=3, keepdims=True)
    m2 = jnp.repeat(m2, Cg, axis=-1).reshape(T, N, C)
    xg = x / jnp.sqrt(m2 + GP_EPS)
    var = jnp.mean(xg.reshape(-1, C) ** 2, axis=0)          # (C,)
    z = xg / jnp.sqrt(var + eps)
    return weight * z + bias                                 # broadcast over (T, N, C)


def _run_case(name, key, N, C, H, W, group_num, dtype, tol):
    kx, kw, kb = jax.random.split(key, 3)
    x = jax.random.normal(kx, (N, C, H, W), dtype=jnp.float32).astype(dtype)
    weight = jnp.ones((C,), jnp.float32) + 0.1 * jax.random.normal(kw, (C,), jnp.float32)
    bias = jnp.zeros((C,), jnp.float32) + 0.05 * jax.random.normal(kb, (C,), jnp.float32)

    out = mask_power_norm_fwd(x, weight, bias, eps=1e-5, group_num=group_num)
    out = jax.block_until_ready(out)
    ref = mask_power_norm_reference(x, weight, bias, eps=1e-5, group_num=group_num)

    assert out.shape == (H * W, N, C), (name, out.shape)
    err = float(jnp.max(jnp.abs(out.astype(jnp.float32) - ref)))
    assert jnp.allclose(out.astype(jnp.float32), ref, rtol=tol, atol=tol), (name, err)


if __name__ == "__main__":
    key = jax.random.PRNGKey(0)
    k1, k2, k3, k4, k5 = jax.random.split(key, 5)

    # primary case: C=32, lane-packed (p=4), single group
    _run_case("base_f32", k1, N=2, C=32, H=8, W=8, group_num=1, dtype=jnp.float32, tol=2e-5)
    # grouped scaling (group_num=4)
    _run_case("groups_f32", k2, N=2, C=32, H=8, W=8, group_num=4, dtype=jnp.float32, tol=2e-5)
    # awkward C / ragged M: C=48 (p=8, C_pack=384), M=75 not a multiple of p or the tile
    _run_case("ragged_f32", k3, N=3, C=48, H=5, W=5, group_num=1, dtype=jnp.float32, tol=2e-5)
    # p=1 lane-reduce path (C >= 128)
    _run_case("wide_f32", k4, N=2, C=128, H=4, W=4, group_num=1, dtype=jnp.float32, tol=2e-5)
    # bf16 input/output (f32 accumulation inside the kernel)
    _run_case("base_bf16", k5, N=2, C=32, H=8, W=8, group_num=1, dtype=jnp.bfloat16, tol=3e-2)

    print("KERNEL_OK")
</pallas_src>

<mosaic_0001>
module attributes {stable_mosaic.version = 11 : i64} {
  func.func @_stage1_seg_kernel(%arg0: i32, %arg1: memref<16x128xf32, #tpu.memory_space<vmem>>, %arg2: memref<128x8xf32, #tpu.memory_space<vmem>>, %arg3: memref<8x128xf32, #tpu.memory_space<vmem>>, %arg4: memref<1x1x128xf32, #tpu.memory_space<vmem>>) attributes {dimension_semantics = [#tpu.dimension_semantics<parallel>], iteration_bounds = array<i64: 2>, scalar_prefetch = 0 : i64, scratch_operands = 0 : i64, tpu.core_type = #tpu.core_type<tc>, window_params = [{transform_indices = @transform_0, window_bounds = array<i64: 16, 128>}, {pipeline_mode = #tpu.pipeline_mode<synchronous>, transform_indices = @transform_1, window_bounds = array<i64: 128, 8>}, {pipeline_mode = #tpu.pipeline_mode<synchronous>, transform_indices = @transform_2, window_bounds = array<i64: 8, 128>}, {transform_indices = @transform_3, window_bounds = array<i64: 1, 1, 128>}]} {
    %c0 = arith.constant 0 : index
    %c0_0 = arith.constant 0 : index
    %0 = vector.load %arg1[%c0, %c0_0] : memref<16x128xf32, #tpu.memory_space<vmem>>, vector<16x128xf32>
    %c0_1 = arith.constant 0 : index
    %c0_2 = arith.constant 0 : index
    %1 = vector.load %arg2[%c0_1, %c0_2] : memref<128x8xf32, #tpu.memory_space<vmem>>, vector<128x8xf32>
    %c0_3 = arith.constant 0 : index
    %c0_4 = arith.constant 0 : index
    %2 = vector.load %arg3[%c0_3, %c0_4] : memref<8x128xf32, #tpu.memory_space<vmem>>, vector<8x128xf32>
    %3 = arith.mulf %0, %0 : vector<16x128xf32>
    %cst = arith.constant dense<0.000000e+00> : vector<16x8xf32>
    %4 = tpu.matmul %3, %1, %cst {dimension_numbers = #tpu.dot_dimension_numbers<[1], [0], [0], [1], [0, 0, 1, 1], [], []>} : vector<16x128xf32>, vector<128x8xf32>, vector<16x8xf32> -> vector<16x8xf32>
    %cst_5 = arith.constant 3.125000e-02 : f32
    %5 = vector.broadcast %cst_5 : f32 to vector<16x8xf32>
    %6 = arith.mulf %4, %5 : vector<16x8xf32>
    %cst_6 = arith.constant 9.99999974E-6 : f32
    %7 = vector.broadcast %cst_6 : f32 to vector<16x8xf32>
    %8 = arith.addf %6, %7 : vector<16x8xf32>
    %9 = math.rsqrt %8 : vector<16x8xf32>
    %cst_7 = arith.constant dense<0.000000e+00> : vector<16x128xf32>
    %10 = tpu.matmul %9, %2, %cst_7 {dimension_numbers = #tpu.dot_dimension_numbers<[1], [0], [0], [1], [0, 0, 1, 1], [], []>} : vector<16x8xf32>, vector<8x128xf32>, vector<16x128xf32> -> vector<16x128xf32>
    %11 = arith.mulf %0, %10 : vector<16x128xf32>
    %12 = arith.mulf %11, %11 : vector<16x128xf32>
    %cst_8 = arith.constant dense<0.000000e+00> : vector<128xf32>
    %13 = vector.multi_reduction <add>, %12, %cst_8 [0] : vector<16x128xf32> to vector<128xf32>
    %14 = vector.shape_cast %13 : vector<128xf32> to vector<1x128xf32>
    %15 = vector.shape_cast %14 : vector<1x128xf32> to vector<1x1x128xf32>
    %c0_9 = arith.constant 0 : index
    %c0_10 = arith.constant 0 : index
    %c0_11 = arith.constant 0 : index
    %16 = vector.load %arg4[%c0_9, %c0_10, %c0_11] : memref<1x1x128xf32, #tpu.memory_space<vmem>>, vector<1x1x128xf32>
    tpu.vector_store %arg4[%c0_9, %c0_10, %c0_11], %15 {strides = array<i32>} : memref<1x1x128xf32, #tpu.memory_space<vmem>>, vector<1x1x128xf32>,
    return
  }
  func.func @transform_0(%arg0: i32) -> (i32, i32) {
    %c0_i32 = arith.constant 0 : i32
    %c0_i32_0 = arith.constant 0 : i32
    return %arg0, %c0_i32 : i32, i32
  }
  func.func @transform_1(%arg0: i32) -> (i32, i32) {
    %c0_i32 = arith.constant 0 : i32
    %c0_i32_0 = arith.constant 0 : i32
    %c0_i32_1 = arith.constant 0 : i32
    return %c0_i32, %c0_i32_0 : i32, i32
  }
  func.func @transform_2(%arg0: i32) -> (i32, i32) {
    %c0_i32 = arith.constant 0 : i32
    %c0_i32_0 = arith.constant 0 : i32
    %c0_i32_1 = arith.constant 0 : i32
    return %c0_i32, %c0_i32_0 : i32, i32
  }
  func.func @transform_3(%arg0: i32) -> (i32, i32, i32) {
    %c0_i32 = arith.constant 0 : i32
    %c0_i32_0 = arith.constant 0 : i32
    %c0_i32_1 = arith.constant 0 : i32
    return %arg0, %c0_i32, %c0_i32_0 : i32, i32, i32
  }
}

</mosaic_0001>

<bundles_post_ra>
// kernel: tpu_custom_call.1
= control target key start
LH: loop header
LB: loop body
LE: loop exit
PB: predicated region body
PF: predicated region fallthrough
CT: control target
= control target key end

     0   :  { %8 = vsyncpa [#allocation3], 0  ;;  %s816_s0 = inlined_call_operand.vmem [shape: f32[32,128], index: 0, kind: input, shape index: {}]   ;;  %s817_s1 = inlined_call_operand.vmem [shape: f32[128,8], index: 1, kind: input, shape index: {}]   ;;  %s818_s2 = inlined_call_operand.vmem [shape: f32[8,128], index: 2, kind: input, shape index: {}]   ;;  %s819_s3 = inlined_call_operand.hbm [shape: f32[2,1,128], index: 3, kind: output, shape index: {}]  }
   0x1   :  { %10 = vsyncpa [#allocation3 + $0x1], 0  ;;  %s666_s12 = smov 0   ;;  %s668_s13 = smov 0  }
   0x2   :  { %s670_s14 = smov 0   ;;  %s672_s15 = smov 0  }
   0x3 LB: > { %s687_s16 = sadd.s32 4294967295, %s643_s15   ;;  %s434_s17 = sadd.s32 4294967294, %s643_s15   ;;  %s643_s15 = sphi %s672_s15, %s825_s15   ;;  %s639_s14 = sphi %s670_s14, %s824_s14   ;;  %s635_s13 = sphi %s668_s13, %s823_s13   ;;  %s631_s12 = sphi %s666_s12, %s822_s12  }
   0x4   : > { %s691_s18 = sadd.s32 1, %s643_s15   ;;  %s91_s19 = sadd.s32 1, %s639_s14 }
   0x5   : > { %s88_s20 = ssub.s32 %s643_s15, %s691_s18  ;;  %p101_p0 = scmp.ne.s32.totalorder %s639_s14, %s635_s13 }
   0x6   : > { %p89_p1 = scmp.eq.s32.totalorder %s88_s20, 0  ;;  %p102_p2 = scmp.eq.s32.totalorder %s687_s16, 1 }
   0x7   : > { %p107_p3 = scmp.ne.s32.totalorder %s635_s13, %s631_s12  ;;  %p108_p4 = scmp.eq.s32.totalorder %s434_s17, 1 }
   0x8   : > { %s702_s21 = scalar_select %p89_p1, %s639_s14, %s91_s19  }
   0x9   : > { %p704_p5 = por %p102_p2, %p101_p0  ;;  %p708_p6 = por %p108_p4, %p107_p3 }
   0xa   : > { %p437_p7 = scmp.ge.s32.totalorder %s643_s15, 1  ;;  %p141_p8 = scmp.lt.s32.totalorder %s643_s15, 3 }
   0xc   : > { %p142_p9 = pnand %p437_p7, %p141_p8 }
   0xd   : > { %v172_v0 = vld [vmem:[%s817_s1] sm:$0xff] (!%p142_p9)  ;;  %v173_v1 = vld [vmem:[%s817_s1 + $0x8] sm:$0xff] (!%p142_p9)  ;;  %v174_v2 = vld [vmem:[%s817_s1 + $0x10] sm:$0xff] (!%p142_p9)  ;;  %s438_s30 = sshll.u32 (!%p142_p9), %s687_s16, 1  ;;  %vm272_vm0 = vcmask (!%p142_p9), 64512   ;;  %s442_s28 = sshll.u32 (!%p142_p9), %s687_s16, 4 }
   0xe   : > { %145 = sbr.rel (%p142_p9) target bundleno = 522 (0x20a), region = 32  ;;  %v506_v3 = vpack.c.bf16 (!%p142_p9), %v173_v1, %v172_v0  ;;  %v175_v4 = vld [vmem:[%s817_s1 + $0x18] sm:$0xff] (!%p142_p9)  ;;  %p165_p10 = scmp.lt.s32.totalorder (!%p142_p9), %s438_s30, 3  ;;  %v176_v6 = vld [vmem:[%s817_s1 + $0x20] sm:$0xff] (!%p142_p9)  ;;  %v177_v7 = vld [vmem:[%s817_s1 + $0x28] sm:$0xff] (!%p142_p9) }
   0xf   : > { %v510_v5 = vpack.c.bf16 (!%p142_p9), %v175_v4, %v174_v2  ;;  %v514_v8 = vpack.c.bf16 (!%p142_p9), %v177_v7, %v176_v6  ;;  %v178_v9 = vld [vmem:[%s817_s1 + $0x30] sm:$0xff] (!%p142_p9)  ;;  %v179_v10 = vld [vmem:[%s817_s1 + $0x38] sm:$0xff] (!%p142_p9)  ;;  %v180_v14 = vld [vmem:[%s817_s1 + $0x40] sm:$0xff] (!%p142_p9)  ;;  %s774_s6 = scalar_lea.hbm (!%p142_p9), %s819_s3, %s442_s28  ;;  %s645_s16 = smov (!%p142_p9), [#allocation2]  }
  0x10   : > { %507 = vmatprep.subr.bf16.mxu0 (!%p142_p9), %v506_v3  ;;  %v518_v13 = vpack.c.bf16 (!%p142_p9), %v179_v10, %v178_v9  ;;  %v181_v15 = vld [vmem:[%s817_s1 + $0x48] sm:$0xff] (!%p142_p9)  ;;  %v182_v17 = vld [vmem:[%s817_s1 + $0x50] sm:$0xff] (!%p142_p9)  ;;  %v183_v18 = vld [vmem:[%s817_s1 + $0x58] sm:$0xff] (!%p142_p9)  ;;  %s585_s9 = sshll.u32 (!%p142_p9), %s645_s16, 4  ;;  %s586_s9 = int_to_ptr.vmem [resolvable:$false] %s585_s9 }
  0x11   : > { %509 = vmatpush3.bf16.msra.mxu0 (!%p142_p9), %v506_v3  ;;  %v522_v16 = vpack.c.bf16 (!%p142_p9), %v181_v15, %v180_v14  ;;  %v526_v19 = vpack.c.bf16 (!%p142_p9), %v183_v18, %v182_v17  ;;  %v184_v20 = vld [vmem:[%s817_s1 + $0x60] sm:$0xff] (!%p142_p9)  ;;  %v185_v21 = vld [vmem:[%s817_s1 + $0x68] sm:$0xff] (!%p142_p9)  ;;  %v186_v23 = vld [vmem:[%s817_s1 + $0x70] sm:$0xff] (!%p142_p9) }
  0x12   : > { %511 = vmatprep.subr.bf16.mxu0 (!%p142_p9), %v510_v5  ;;  %v530_v22 = vpack.c.bf16 (!%p142_p9), %v185_v21, %v184_v20  ;;  %v187_v24 = vld [vmem:[%s817_s1 + $0x78] sm:$0xff] (!%p142_p9)  ;;  %v188_v28 = vld [vmem:[%s818_s2] sm:$0xff] (!%p142_p9) }
  0x13   : > { %v534_v25 = vpack.c.bf16 (!%p142_p9), %v187_v24, %v186_v23  ;;  %501 = vmatprep.subr.mxu1 (!%p142_p9), %v188_v28 }
  0x14   : > { %502 = vmatpush3.msra.mxu1 (!%p142_p9), %v188_v28 }
  0x15   : > { %s827_s30 = smov (!%p165_p10, %s438_s30), 3  ;;  %513 = vmatpush3.bf16.msra.mxu0 %v510_v5 }
  0x16   : > { %s439_s10 = sshll.u32 %s827_s30, 3  ;;  %515 = vmatprep.subr.bf16.mxu0 %v514_v8 }
  0x17   : > { %s168_s26 = scalar_lea.vmem %s816_s0, %s439_s10  ;;  %s587_s10 = scalar_lea.vmem %s586_s9, 32 }
  0x18   : > { %v170_v11 = vld [vmem:[%s168_s26] sm:$0xff]  ;;  %v171_v26 = vld [vmem:[%s168_s26 + $0x8] sm:$0xff]  ;;  %s162_s26 = sand.u32 1, %s635_s13  }
  0x19   : > { %v189_v12 = vmul.f32 %v170_v11, %v170_v11  ;;  %517 = vmatpush3.bf16.msra.mxu0 %v514_v8  ;;  %v190_v27 = vmul.f32 %v171_v26, %v171_v26  ;;  %s163_s29 = scalar_lea.vmem [#allocation2], %s162_s26  ;;  %s367_s7 = scalar_lea.sflag [#allocation3], %s162_s26 }
  0x1a   : > { %519 = vmatprep.subr.bf16.mxu0 %v518_v13  ;;  %s379_s30 = sshll.u32 %s163_s29, 4  ;;  %s776_s30 = int_to_ptr.vmem [resolvable:$true] %s379_s30 }
  0x1b   : > { %498 = vmatprep.mubr.f32.mxu0 %v189_v12  ;;  %s581_s8 = scalar_lea.vmem %s776_s30, 16  ;;  %p588_p0 = scmp.lt.s32.totalorder %s776_s30, %s586_s9 }
  0x1c   : > { %p582_p11 = scmp.ne.s32.totalorder %s776_s30, %s581_s8  ;;  %p589_p1 = scmp.lt.s32.totalorder %s587_s10, %s581_s8 }
  0x1d   : > { %521 = vmatpush3.bf16.msra.mxu0 %v518_v13 }
  0x1e   : > { %523 = vmatprep.subr.bf16.mxu0 %v522_v16  ;;  %p583_p12 = pnand %p582_p11, %p704_p5  ;;  %p590_p2 = por %p589_p1, %p588_p0 }
  0x20   : > { %p584_p13 = pneg %p583_p12 }
  0x21   : > { %525 = vmatpush3.bf16.msra.mxu0 %v522_v16 }
  0x22   : > { %527 = vmatprep.subr.bf16.mxu0 %v526_v19  ;;  %p591_p3 = pnand %p590_p2, %p584_p13 }
  0x25   : > { %529 = vmatpush3.bf16.msra.mxu0 %v526_v19 }
  0x26   : > { %531 = vmatprep.subr.bf16.mxu0 %v530_v22 }
  0x29   : > { %533 = vmatpush3.bf16.msra.mxu0 %v530_v22 }
  0x2a   : > { %535 = vmatprep.subr.bf16.mxu0 %v534_v25 }
  0x2d   : > { %537 = vmatpush3.bf16.msra.mxu0 %v534_v25 }
  0x30   : > { %499 = vmatmul.mubr.f32.vlgmr.msra.gmra.mrb[0].mxu0 %v190_v27 }
 0x103   : > { %v500_v29 = vpop.f32.mrb[0].mxu0 }
 0x104   : > { %v267_v30 = vmul.f32 0.03125, %v500_v29  ;;  %v257_v31 = vpop.f32.mrb[1].mxu0 }
 0x105   : > { %v266_v32 = vmul.f32 0.03125, %v257_v31 }
 0x106   : > { %v269_v33 = vadd.f32 1e-05, %v267_v30 }
 0x107   : > { %v268_v34 = vadd.f32 1e-05, %v266_v32 }
 0x109   : > { %577 = vrsqrt.f32 %v268_v34 }
 0x10a   : > { %579 = vrsqrt.f32 %v269_v33 }
 0x113   : > { %v578_v35 = vpop.eup %577 }
 0x114   : > { %v580_v36 = vpop.eup %579  ;;  %503 = vmatprep.mubr.msk.f32.mxu1 %vm272_vm0, %v578_v35 }
 0x115   : > { %504 = vmatmul.mubr.msk.f32.vlgmr.msra.gmra.mrb[0].mxu1 %vm272_vm0, %v580_v36 }
 0x1e8   : > { %v505_v37 = vpop.f32.mrb[0].mxu1 }
 0x1e9   : > { %v355_v38 = vmul.f32 %v505_v37, %v171_v26  ;;  %v345_v39 = vpop.f32.mrb[1].mxu1 }
 0x1ea   : > { %v354_v40 = vmul.f32 %v345_v39, %v170_v11 }
 0x1eb   : > { %v357_v41 = vmul.f32 %v355_v38, %v355_v38 }
 0x1ec   : > { %v356_v42 = vmul.f32 %v354_v40, %v354_v40 }
 0x1ee   : > { %v358_v43 = vadd.f32 %v357_v41, %v356_v42 }
 0x1f0   : > { %v359_v44 = vrot.slane %v358_v43, 4 }
 0x1f2   : > { %v360_v45 = vadd.f32 %v359_v44, %v358_v43 }
 0x1f4   : > { %v361_v46 = vrot.slane %v360_v45, 2 }
 0x1f6   : > { %v362_v47 = vadd.f32 %v361_v46, %v360_v45 }
 0x1f8   : > { %v363_v48 = vrot.slane %v362_v47, 1 }
 0x1fa   : > { %v364_v49 = vadd.f32 %v363_v48, %v362_v47 }
 0x1fc   : > { %365 = vst [vmem:[%s163_s29] sm:$0x1] %v364_v49 }
 0x1fd   : > { %594 = shalt.err (!%p591_p3)
}
 0x1fe   : > { %s595_s11 = scalar_lea.hbm %s774_s6, 16  ;;  %s599_s20 = scalar_lea.hbm %s819_s3, 32 }
 0x1ff   : > { %p596_p4 = scmp.ne.s32.totalorder %s774_s6, %s595_s11  ;;  %p600_p9 = scmp.lt.u32.totalorder %s774_s6, %s819_s3 }
 0x200   : > { %p601_p10 = scmp.lt.u32.totalorder %s599_s20, %s595_s11  ;;  %p603_p12 = scmp.lt.u32.totalorder %s595_s11, %s774_s6 }
 0x201   : > { %p597_p7 = pnand %p596_p4, %p704_p5 }
 0x202   : > { %p602_p11 = por %p601_p10, %p600_p9 }
 0x203   : > { %p598_p8 = pneg %p597_p7 }
 0x204   : > { %p604_p13 = por %p603_p12, %p602_p11 }
 0x206   : > { %p605_p0 = pnand %p604_p13, %p598_p8 }
 0x208   : > { %608 = shalt.err (!%p605_p0)
}
 0x209   : > { %538 = dma.vmem_to_hbm [thread:$0]  (%p704_p5), %s776_s30, 16, %s774_s6, %s367_s7  }
 0x20a PF: > { %p544_p1 = scmp.ge.s32.totalorder %s643_s15, 2  ;;  %s391_s27 = sand.u32 1, %s631_s12  }
 0x20b   : > { %s392_s26 = scalar_lea.sflag [#allocation3], %s391_s27 }
 0x20c   : > { %p541_p2 = pnand %p544_p1, %p708_p6 }
 0x20e   : > { %626 = dma.done.wait (!%p541_p2), %s392_s26, 16  }
 0x20f   : > { %628 = vsyncadd (!%p541_p2), %s392_s26, 4294967280  ;;  %p13_p3 = scmp.ge.s32.totalorder %s691_s18, 4   ;;  %s822_s12 = smov %s635_s13 }
 0x210   : > { %s823_s13 = smov %s639_s14  ;;  %s824_s14 = smov %s702_s21 }
 0x211   : > { %s825_s15 = smov %s691_s18  ;;  %15 = sbr.rel (!%p13_p3) target bundleno = 3 (0x3), region = 67 }
 0x218   :  { %396 = vsyncpa [#allocation3], 1 }
 0x219   :  { %398 = vsyncpa [#allocation3 + $0x1], 1 }

</bundles_post_ra>
